<compile_context>
chip_gen: v5e
topology: v5e:2x2
jax: 0.10.0
libtpu: 0.0.40
codegen_flags: <defaults>
</compile_context>

<pallas_src>
import functools
import math

import jax
import jax.numpy as jnp
from jax import lax
from jax.experimental import pallas as pl
from jax.experimental.pallas import tpu as pltpu

_MIB = 1024 * 1024


def _mha_kernel(q_ref, k_ref, v_ref,
                wq_ref, bq_ref, wk_ref, bk_ref,
                wv_ref, bv_ref, wo_ref, bo_ref,
                o_ref, *, nums_head, head_dim, mxu_dtype):
    """One grid step: (Bt, S, H) activations; projections + attention + o_proj."""
    Bt, S, H = q_ref.shape
    exact = jnp.dtype(mxu_dtype) == jnp.dtype(jnp.float32)

    def mx(x):  # cast MXU operands only; accumulation / softmax stats stay f32.
        return x if x.dtype == jnp.dtype(mxu_dtype) else x.astype(mxu_dtype)

    # ---- Q/K/V projections: one wide (Bt*S, H) x (H, H) MXU pass each ----
    # (weights/activations already arrive in mxu_dtype from the wrapper)
    q2 = q_ref[...].reshape(Bt * S, H)
    k2 = k_ref[...].reshape(Bt * S, H)
    v2 = v_ref[...].reshape(Bt * S, H)

    Q = jnp.dot(mx(q2), wq_ref[...], preferred_element_type=jnp.float32) + bq_ref[0]
    K = jnp.dot(mx(k2), wk_ref[...], preferred_element_type=jnp.float32) + bk_ref[0]
    V = jnp.dot(mx(v2), wv_ref[...], preferred_element_type=jnp.float32) + bv_ref[0]

    # Fold 1/sqrt(head_dim) into Q once (cheaper than scaling (S, S) scores).
    Q = Q * (1.0 / math.sqrt(head_dim))

    # ---- per-(batch, head) attention, all in registers (no VMEM round-trip) ----
    ctx_rows = []
    for b in range(Bt):
        rows = slice(b * S, (b + 1) * S)
        Qb, Kb, Vb = Q[rows], K[rows], V[rows]
        head_ctx = []
        for h in range(nums_head):
            cols = slice(h * head_dim, (h + 1) * head_dim)
            Qh, Kh, Vh = Qb[:, cols], Kb[:, cols], Vb[:, cols]

            # scores[q, k] = <Qh[q], Kh[k]> — contract the lane axis directly,
            # no materialized transpose.
            s = lax.dot_general(mx(Qh), mx(Kh), (((1,), (1,)), ((), ())),
                                preferred_element_type=jnp.float32)

            # Numerically stable softmax over keys (dim=3 in PyTorch); f32 stats.
            m = jnp.max(s, axis=-1, keepdims=True)
            p = jnp.exp(s - m)
            l = jnp.sum(p, axis=-1, keepdims=True)
            if exact:
                p = p / l                               # exact on the f32 path
            else:
                p = p * pl.reciprocal(l, approx=True)   # EUP vrcp — off the VPU path

            head_ctx.append(jnp.dot(mx(p), mx(Vh),
                                    preferred_element_type=jnp.float32))
        ctx_rows.append(jnp.concatenate(head_ctx, axis=-1))   # (S, H)
    ctx = jnp.concatenate(ctx_rows, axis=0)                   # (Bt*S, H)

    # ---- output projection: single wide (Bt*S, H) x (H, H) pass ----
    o = jnp.dot(mx(ctx), wo_ref[...], preferred_element_type=jnp.float32) + bo_ref[0]
    o_ref[...] = o.reshape(Bt, S, H).astype(o_ref.dtype)


def _vmem_estimate_bytes(Bt, S, H, act_bytes, w_bytes):
    io = 2 * 4 * Bt * S * H * act_bytes            # q, k, v, out: double-buffered
    wb = 2 * (4 * H * H * w_bytes + 4 * H * 4)     # weights + f32 biases, double-buffered
    tmp = 8 * Bt * S * H * 4                       # Q/K/V/ctx f32 temporaries + slack
    return io + wb + tmp


def _vmem_cap_bytes():
    # ~75% of physical VMEM: ≈96 MiB on v5e/v6e (128 MiB), ≈48 MiB on v7x (64 MiB).
    try:
        cap = int(0.75 * pltpu.get_tpu_info().vmem_capacity_bytes)
    except Exception:
        cap = 48 * _MIB                            # conservative (v7x-safe) fallback
    return max(cap, 16 * _MIB)


def _default_batch_block(B, S, H, act_bytes, w_bytes, cap):
    """Largest divisor of B that fits the VMEM budget, keeps the grid >= 2
    (so v7x's two TensorCores both get work) and bounds the unrolled batch
    loop / vreg residency."""
    best = 1
    for bt in range(1, B + 1):
        if B % bt:
            continue
        if B >= 2 and B // bt < 2:
            continue                               # keep >= 2 grid steps
        if bt * S > 1024:
            continue                               # bound unrolled-loop residency
        if _vmem_estimate_bytes(bt, S, H, act_bytes, w_bytes) > cap:
            continue
        best = bt
    return best


def multi_head_attention(q, k, v, params, *, nums_head,
                         batch_block=None, mxu_dtype=jnp.bfloat16):
    """q, k, v: [B, S, H]; params: dict of transposed weights / biases.

    batch_block: batch elements per grid step (None => auto: largest block that
                 fits the VMEM budget while keeping the grid >= 2).
    mxu_dtype:   dtype of MXU operands (bf16 default for throughput, f32 for an
                 exact path); accumulation and softmax stats are always f32.
    """
    B, S, H = q.shape
    head_dim = H // nums_head
    assert head_dim * nums_head == H
    out_dtype = q.dtype

    op_dtype = jnp.dtype(mxu_dtype)
    act_bytes = op_dtype.itemsize
    w_bytes = op_dtype.itemsize

    cap = _vmem_cap_bytes()
    if batch_block is None:
        batch_block = _default_batch_block(B, S, H, act_bytes, w_bytes, cap)
    assert B % batch_block == 0
    Bt = batch_block

    # Pre-cast MXU operands once in the wrapper: halves HBM->VMEM DMA for the
    # 4*H^2 weights (and activations) and removes per-step VPU cast ops.
    # Biases stay f32 — they are added to f32 accumulators.
    def cast(x):
        return x if x.dtype == op_dtype else x.astype(op_dtype)

    q_c, k_c, v_c = cast(q), cast(k), cast(v)
    wq, wk, wv, wo = (cast(params[n]) for n in ("wq_t", "wk_t", "wv_t", "wo_t"))
    bq, bk, bv, bo = (params[n].astype(jnp.float32) for n in ("bq", "bk", "bv", "bo"))

    kernel = functools.partial(_mha_kernel, nums_head=nums_head,
                               head_dim=head_dim, mxu_dtype=mxu_dtype)

    io_spec = pl.BlockSpec((Bt, S, H), lambda i: (i, 0, 0))
    # Constant index maps: weights/biases DMA'd once, VMEM-resident across grid.
    w_spec = pl.BlockSpec((H, H), lambda i: (0, 0))
    b_spec = pl.BlockSpec((1, H), lambda i: (0, 0))

    vmem_limit = int(min(cap, max(16 * _MIB,
                                  2 * _vmem_estimate_bytes(Bt, S, H, act_bytes, w_bytes))))

    # Advisory cost model so XLA schedules surrounding ops / collectives sensibly.
    flops = 8 * B * S * H * H + 4 * B * S * S * H
    cost = pl.CostEstimate(
        flops=flops,
        transcendentals=B * nums_head * S * S,
        bytes_accessed=4 * B * S * H * act_bytes + 4 * H * H * w_bytes + 4 * H * 4,
    )

    return pl.pallas_call(
        kernel,
        out_shape=jax.ShapeDtypeStruct((B, S, H), out_dtype),
        grid_spec=pltpu.PrefetchScalarGridSpec(
            num_scalar_prefetch=0,
            grid=(B // Bt,),
            in_specs=[io_spec, io_spec, io_spec,
                      w_spec, b_spec,   # q_proj
                      w_spec, b_spec,   # k_proj
                      w_spec, b_spec,   # v_proj
                      w_spec, b_spec],  # o_proj
            out_specs=io_spec,
        ),
        compiler_params=pltpu.CompilerParams(
            dimension_semantics=("parallel",),
            vmem_limit_bytes=vmem_limit,
        ),
        cost_estimate=cost,
    )(q_c, k_c, v_c, wq, bq, wk, bk, wv, bv, wo, bo)


def _init_params(key, hidden_dim):
    """Deterministic torch-like nn.Linear init: U(-1/sqrt(in), 1/sqrt(in))."""
    bound = 1.0 / math.sqrt(hidden_dim)
    keys = jax.random.split(key, 8)

    def w(k):
        return jax.random.uniform(k, (hidden_dim, hidden_dim),
                                  jnp.float32, -bound, bound)

    def b(k):
        return jax.random.uniform(k, (1, hidden_dim),
                                  jnp.float32, -bound, bound)

    # Store weights already transposed (W.T) so the kernel does x @ W_T + b.
    return {
        "wq_t": w(keys[0]).T, "bq": b(keys[1]),
        "wk_t": w(keys[2]).T, "bk": b(keys[3]),
        "wv_t": w(keys[4]).T, "bv": b(keys[5]),
        "wo_t": w(keys[6]).T, "bo": b(keys[7]),
    }


def _reference(q, k, v, params, *, nums_head):
    """Pure-JAX reference mirroring the PyTorch forward (mask=None)."""
    B, S, H = q.shape
    hd = H // nums_head
    Q = q @ params["wq_t"] + params["bq"][0]
    K = k @ params["wk_t"] + params["bk"][0]
    V = v @ params["wv_t"] + params["bv"][0]
    Qh = Q.reshape(B, S, nums_head, hd).transpose(0, 2, 1, 3)
    Kh = K.reshape(B, S, nums_head, hd).transpose(0, 2, 1, 3)
    Vh = V.reshape(B, S, nums_head, hd).transpose(0, 2, 1, 3)
    scores = Qh @ Kh.transpose(0, 1, 3, 2) / math.sqrt(hd)
    attn = jax.nn.softmax(scores, axis=3)
    out = (attn @ Vh).transpose(0, 2, 1, 3).reshape(B, S, H)
    return out @ params["wo_t"] + params["bo"][0]


if __name__ == "__main__":
    B, S, H, NH = 2, 8, 32, 4

    key = jax.random.PRNGKey(0)
    kq, kk, kv, kp = jax.random.split(key, 4)
    q = jax.random.normal(kq, (B, S, H), jnp.float32)
    k = jax.random.normal(kk, (B, S, H), jnp.float32)
    v = jax.random.normal(kv, (B, S, H), jnp.float32)
    params = _init_params(kp, H)

    ref = _reference(q, k, v, params, nums_head=NH)

    # Path 1: exact f32 MXU operands (exact softmax division), grid = 2.
    out_f32 = multi_head_attention(q, k, v, params, nums_head=NH,
                                   batch_block=1, mxu_dtype=jnp.float32)
    out_f32 = jax.block_until_ready(out_f32)
    assert out_f32.shape == (B, S, H)
    assert out_f32.dtype == q.dtype
    assert jnp.allclose(out_f32, ref, atol=1e-4, rtol=1e-4), "f32 path mismatch"

    # Path 2: default bf16 MXU operands (f32 accumulation), auto batch_block
    # (keeps grid >= 2 so both v7x TensorCores get work).
    out_bf16 = multi_head_attention(q, k, v, params, nums_head=NH,
                                    mxu_dtype=jnp.bfloat16)
    out_bf16 = jax.block_until_ready(out_bf16)
    assert out_bf16.shape == (B, S, H)
    assert out_bf16.dtype == q.dtype
    assert jnp.allclose(out_bf16, ref, atol=2e-2, rtol=2e-2), "bf16 path mismatch"

    print("KERNEL_OK")
</pallas_src>

<mosaic_0001>
module attributes {stable_mosaic.version = 11 : i64} {
  func.func @_mha_kernel(%arg0: i32, %arg1: memref<1x8x32xf32, #tpu.memory_space<vmem>>, %arg2: memref<1x8x32xf32, #tpu.memory_space<vmem>>, %arg3: memref<1x8x32xf32, #tpu.memory_space<vmem>>, %arg4: memref<32x32xf32, #tpu.memory_space<vmem>>, %arg5: memref<1x32xf32, #tpu.memory_space<vmem>>, %arg6: memref<32x32xf32, #tpu.memory_space<vmem>>, %arg7: memref<1x32xf32, #tpu.memory_space<vmem>>, %arg8: memref<32x32xf32, #tpu.memory_space<vmem>>, %arg9: memref<1x32xf32, #tpu.memory_space<vmem>>, %arg10: memref<32x32xf32, #tpu.memory_space<vmem>>, %arg11: memref<1x32xf32, #tpu.memory_space<vmem>>, %arg12: memref<1x8x32xf32, #tpu.memory_space<vmem>>) attributes {dimension_semantics = [#tpu.dimension_semantics<parallel>], iteration_bounds = array<i64: 2>, scalar_prefetch = 0 : i64, scratch_operands = 0 : i64, tpu.core_type = #tpu.core_type<tc>, window_params = [{transform_indices = @transform_0, window_bounds = array<i64: 1, 8, 32>}, {transform_indices = @transform_1, window_bounds = array<i64: 1, 8, 32>}, {transform_indices = @transform_2, window_bounds = array<i64: 1, 8, 32>}, {pipeline_mode = #tpu.pipeline_mode<synchronous>, transform_indices = @transform_3, window_bounds = array<i64: 32, 32>}, {pipeline_mode = #tpu.pipeline_mode<synchronous>, transform_indices = @transform_4, window_bounds = array<i64: 1, 32>}, {pipeline_mode = #tpu.pipeline_mode<synchronous>, transform_indices = @transform_5, window_bounds = array<i64: 32, 32>}, {pipeline_mode = #tpu.pipeline_mode<synchronous>, transform_indices = @transform_6, window_bounds = array<i64: 1, 32>}, {pipeline_mode = #tpu.pipeline_mode<synchronous>, transform_indices = @transform_7, window_bounds = array<i64: 32, 32>}, {pipeline_mode = #tpu.pipeline_mode<synchronous>, transform_indices = @transform_8, window_bounds = array<i64: 1, 32>}, {pipeline_mode = #tpu.pipeline_mode<synchronous>, transform_indices = @transform_9, window_bounds = array<i64: 32, 32>}, {pipeline_mode = #tpu.pipeline_mode<synchronous>, transform_indices = @transform_10, window_bounds = array<i64: 1, 32>}, {transform_indices = @transform_11, window_bounds = array<i64: 1, 8, 32>}]} {
    %c0 = arith.constant 0 : index
    %c0_0 = arith.constant 0 : index
    %c0_1 = arith.constant 0 : index
    %0 = vector.load %arg1[%c0, %c0_0, %c0_1] : memref<1x8x32xf32, #tpu.memory_space<vmem>>, vector<1x8x32xf32>
    %1 = vector.shape_cast %0 : vector<1x8x32xf32> to vector<8x32xf32>
    %c0_2 = arith.constant 0 : index
    %c0_3 = arith.constant 0 : index
    %c0_4 = arith.constant 0 : index
    %2 = vector.load %arg2[%c0_2, %c0_3, %c0_4] : memref<1x8x32xf32, #tpu.memory_space<vmem>>, vector<1x8x32xf32>
    %3 = vector.shape_cast %2 : vector<1x8x32xf32> to vector<8x32xf32>
    %c0_5 = arith.constant 0 : index
    %c0_6 = arith.constant 0 : index
    %c0_7 = arith.constant 0 : index
    %4 = vector.load %arg3[%c0_5, %c0_6, %c0_7] : memref<1x8x32xf32, #tpu.memory_space<vmem>>, vector<1x8x32xf32>
    %5 = vector.shape_cast %4 : vector<1x8x32xf32> to vector<8x32xf32>
    %c0_8 = arith.constant 0 : index
    %c0_9 = arith.constant 0 : index
    %6 = vector.load %arg4[%c0_8, %c0_9] : memref<32x32xf32, #tpu.memory_space<vmem>>, vector<32x32xf32>
    %cst = arith.constant dense<0.000000e+00> : vector<8x32xf32>
    %7 = tpu.matmul %1, %6, %cst {dimension_numbers = #tpu.dot_dimension_numbers<[1], [0], [0], [1], [0, 0, 1, 1], [], []>} : vector<8x32xf32>, vector<32x32xf32>, vector<8x32xf32> -> vector<8x32xf32>
    %c0_10 = arith.constant 0 : index
    %c0_11 = arith.constant 0 : index
    %8 = vector.load %arg5[%c0_10, %c0_11] : memref<1x32xf32, #tpu.memory_space<vmem>>, vector<1x32xf32>
    %9 = vector.shape_cast %8 : vector<1x32xf32> to vector<32xf32>
    %10 = vector.shape_cast %9 : vector<32xf32> to vector<1x32xf32>
    %11 = vector.broadcast %10 : vector<1x32xf32> to vector<8x32xf32>
    %12 = arith.addf %7, %11 : vector<8x32xf32>
    %c0_12 = arith.constant 0 : index
    %c0_13 = arith.constant 0 : index
    %13 = vector.load %arg6[%c0_12, %c0_13] : memref<32x32xf32, #tpu.memory_space<vmem>>, vector<32x32xf32>
    %cst_14 = arith.constant dense<0.000000e+00> : vector<8x32xf32>
    %14 = tpu.matmul %3, %13, %cst_14 {dimension_numbers = #tpu.dot_dimension_numbers<[1], [0], [0], [1], [0, 0, 1, 1], [], []>} : vector<8x32xf32>, vector<32x32xf32>, vector<8x32xf32> -> vector<8x32xf32>
    %c0_15 = arith.constant 0 : index
    %c0_16 = arith.constant 0 : index
    %15 = vector.load %arg7[%c0_15, %c0_16] : memref<1x32xf32, #tpu.memory_space<vmem>>, vector<1x32xf32>
    %16 = vector.shape_cast %15 : vector<1x32xf32> to vector<32xf32>
    %17 = vector.shape_cast %16 : vector<32xf32> to vector<1x32xf32>
    %18 = vector.broadcast %17 : vector<1x32xf32> to vector<8x32xf32>
    %19 = arith.addf %14, %18 : vector<8x32xf32>
    %c0_17 = arith.constant 0 : index
    %c0_18 = arith.constant 0 : index
    %20 = vector.load %arg8[%c0_17, %c0_18] : memref<32x32xf32, #tpu.memory_space<vmem>>, vector<32x32xf32>
    %cst_19 = arith.constant dense<0.000000e+00> : vector<8x32xf32>
    %21 = tpu.matmul %5, %20, %cst_19 {dimension_numbers = #tpu.dot_dimension_numbers<[1], [0], [0], [1], [0, 0, 1, 1], [], []>} : vector<8x32xf32>, vector<32x32xf32>, vector<8x32xf32> -> vector<8x32xf32>
    %c0_20 = arith.constant 0 : index
    %c0_21 = arith.constant 0 : index
    %22 = vector.load %arg9[%c0_20, %c0_21] : memref<1x32xf32, #tpu.memory_space<vmem>>, vector<1x32xf32>
    %23 = vector.shape_cast %22 : vector<1x32xf32> to vector<32xf32>
    %24 = vector.shape_cast %23 : vector<32xf32> to vector<1x32xf32>
    %25 = vector.broadcast %24 : vector<1x32xf32> to vector<8x32xf32>
    %26 = arith.addf %21, %25 : vector<8x32xf32>
    %cst_22 = arith.constant 0.353553385 : f32
    %27 = vector.broadcast %cst_22 : f32 to vector<8x32xf32>
    %28 = arith.mulf %12, %27 : vector<8x32xf32>
    %29 = vector.extract_strided_slice %28 {offsets = [0, 0], sizes = [8, 8], strides = [1, 1]} : vector<8x32xf32> to vector<8x8xf32>
    %30 = vector.extract_strided_slice %19 {offsets = [0, 0], sizes = [8, 8], strides = [1, 1]} : vector<8x32xf32> to vector<8x8xf32>
    %31 = vector.extract_strided_slice %26 {offsets = [0, 0], sizes = [8, 8], strides = [1, 1]} : vector<8x32xf32> to vector<8x8xf32>
    %cst_23 = arith.constant dense<0.000000e+00> : vector<8x8xf32>
    %32 = tpu.matmul %29, %30, %cst_23 {dimension_numbers = #tpu.dot_dimension_numbers<[1], [1], [0], [0], [0, 0, 1, 0], [], []>} : vector<8x8xf32>, vector<8x8xf32>, vector<8x8xf32> -> vector<8x8xf32>
    %cst_24 = arith.constant dense<0xFF800000> : vector<8xf32>
    %33 = vector.multi_reduction <maximumf>, %32, %cst_24 [1] : vector<8x8xf32> to vector<8xf32>
    %34 = vector.shape_cast %33 : vector<8xf32> to vector<8x1xf32>
    %35 = vector.broadcast %34 : vector<8x1xf32> to vector<8x8xf32>
    %36 = arith.subf %32, %35 : vector<8x8xf32>
    %37 = math.exp %36 : vector<8x8xf32>
    %cst_25 = arith.constant dense<0.000000e+00> : vector<8xf32>
    %38 = vector.multi_reduction <add>, %37, %cst_25 [1] : vector<8x8xf32> to vector<8xf32>
    %39 = vector.shape_cast %38 : vector<8xf32> to vector<8x1xf32>
    %40 = vector.broadcast %39 : vector<8x1xf32> to vector<8x8xf32>
    %41 = arith.divf %37, %40 : vector<8x8xf32>
    %cst_26 = arith.constant dense<0.000000e+00> : vector<8x8xf32>
    %42 = tpu.matmul %41, %31, %cst_26 {dimension_numbers = #tpu.dot_dimension_numbers<[1], [0], [0], [1], [0, 0, 1, 1], [], []>} : vector<8x8xf32>, vector<8x8xf32>, vector<8x8xf32> -> vector<8x8xf32>
    %43 = vector.extract_strided_slice %28 {offsets = [0, 8], sizes = [8, 8], strides = [1, 1]} : vector<8x32xf32> to vector<8x8xf32>
    %44 = vector.extract_strided_slice %19 {offsets = [0, 8], sizes = [8, 8], strides = [1, 1]} : vector<8x32xf32> to vector<8x8xf32>
    %45 = vector.extract_strided_slice %26 {offsets = [0, 8], sizes = [8, 8], strides = [1, 1]} : vector<8x32xf32> to vector<8x8xf32>
    %cst_27 = arith.constant dense<0.000000e+00> : vector<8x8xf32>
    %46 = tpu.matmul %43, %44, %cst_27 {dimension_numbers = #tpu.dot_dimension_numbers<[1], [1], [0], [0], [0, 0, 1, 0], [], []>} : vector<8x8xf32>, vector<8x8xf32>, vector<8x8xf32> -> vector<8x8xf32>
    %cst_28 = arith.constant dense<0xFF800000> : vector<8xf32>
    %47 = vector.multi_reduction <maximumf>, %46, %cst_28 [1] : vector<8x8xf32> to vector<8xf32>
    %48 = vector.shape_cast %47 : vector<8xf32> to vector<8x1xf32>
    %49 = vector.broadcast %48 : vector<8x1xf32> to vector<8x8xf32>
    %50 = arith.subf %46, %49 : vector<8x8xf32>
    %51 = math.exp %50 : vector<8x8xf32>
    %cst_29 = arith.constant dense<0.000000e+00> : vector<8xf32>
    %52 = vector.multi_reduction <add>, %51, %cst_29 [1] : vector<8x8xf32> to vector<8xf32>
    %53 = vector.shape_cast %52 : vector<8xf32> to vector<8x1xf32>
    %54 = vector.broadcast %53 : vector<8x1xf32> to vector<8x8xf32>
    %55 = arith.divf %51, %54 : vector<8x8xf32>
    %cst_30 = arith.constant dense<0.000000e+00> : vector<8x8xf32>
    %56 = tpu.matmul %55, %45, %cst_30 {dimension_numbers = #tpu.dot_dimension_numbers<[1], [0], [0], [1], [0, 0, 1, 1], [], []>} : vector<8x8xf32>, vector<8x8xf32>, vector<8x8xf32> -> vector<8x8xf32>
    %57 = vector.extract_strided_slice %28 {offsets = [0, 16], sizes = [8, 8], strides = [1, 1]} : vector<8x32xf32> to vector<8x8xf32>
    %58 = vector.extract_strided_slice %19 {offsets = [0, 16], sizes = [8, 8], strides = [1, 1]} : vector<8x32xf32> to vector<8x8xf32>
    %59 = vector.extract_strided_slice %26 {offsets = [0, 16], sizes = [8, 8], strides = [1, 1]} : vector<8x32xf32> to vector<8x8xf32>
    %cst_31 = arith.constant dense<0.000000e+00> : vector<8x8xf32>
    %60 = tpu.matmul %57, %58, %cst_31 {dimension_numbers = #tpu.dot_dimension_numbers<[1], [1], [0], [0], [0, 0, 1, 0], [], []>} : vector<8x8xf32>, vector<8x8xf32>, vector<8x8xf32> -> vector<8x8xf32>
    %cst_32 = arith.constant dense<0xFF800000> : vector<8xf32>
    %61 = vector.multi_reduction <maximumf>, %60, %cst_32 [1] : vector<8x8xf32> to vector<8xf32>
    %62 = vector.shape_cast %61 : vector<8xf32> to vector<8x1xf32>
    %63 = vector.broadcast %62 : vector<8x1xf32> to vector<8x8xf32>
    %64 = arith.subf %60, %63 : vector<8x8xf32>
    %65 = math.exp %64 : vector<8x8xf32>
    %cst_33 = arith.constant dense<0.000000e+00> : vector<8xf32>
    %66 = vector.multi_reduction <add>, %65, %cst_33 [1] : vector<8x8xf32> to vector<8xf32>
    %67 = vector.shape_cast %66 : vector<8xf32> to vector<8x1xf32>
    %68 = vector.broadcast %67 : vector<8x1xf32> to vector<8x8xf32>
    %69 = arith.divf %65, %68 : vector<8x8xf32>
    %cst_34 = arith.constant dense<0.000000e+00> : vector<8x8xf32>
    %70 = tpu.matmul %69, %59, %cst_34 {dimension_numbers = #tpu.dot_dimension_numbers<[1], [0], [0], [1], [0, 0, 1, 1], [], []>} : vector<8x8xf32>, vector<8x8xf32>, vector<8x8xf32> -> vector<8x8xf32>
    %71 = vector.extract_strided_slice %28 {offsets = [0, 24], sizes = [8, 8], strides = [1, 1]} : vector<8x32xf32> to vector<8x8xf32>
    %72 = vector.extract_strided_slice %19 {offsets = [0, 24], sizes = [8, 8], strides = [1, 1]} : vector<8x32xf32> to vector<8x8xf32>
    %73 = vector.extract_strided_slice %26 {offsets = [0, 24], sizes = [8, 8], strides = [1, 1]} : vector<8x32xf32> to vector<8x8xf32>
    %cst_35 = arith.constant dense<0.000000e+00> : vector<8x8xf32>
    %74 = tpu.matmul %71, %72, %cst_35 {dimension_numbers = #tpu.dot_dimension_numbers<[1], [1], [0], [0], [0, 0, 1, 0], [], []>} : vector<8x8xf32>, vector<8x8xf32>, vector<8x8xf32> -> vector<8x8xf32>
    %cst_36 = arith.constant dense<0xFF800000> : vector<8xf32>
    %75 = vector.multi_reduction <maximumf>, %74, %cst_36 [1] : vector<8x8xf32> to vector<8xf32>
    %76 = vector.shape_cast %75 : vector<8xf32> to vector<8x1xf32>
    %77 = vector.broadcast %76 : vector<8x1xf32> to vector<8x8xf32>
    %78 = arith.subf %74, %77 : vector<8x8xf32>
    %79 = math.exp %78 : vector<8x8xf32>
    %cst_37 = arith.constant dense<0.000000e+00> : vector<8xf32>
    %80 = vector.multi_reduction <add>, %79, %cst_37 [1] : vector<8x8xf32> to vector<8xf32>
    %81 = vector.shape_cast %80 : vector<8xf32> to vector<8x1xf32>
    %82 = vector.broadcast %81 : vector<8x1xf32> to vector<8x8xf32>
    %83 = arith.divf %79, %82 : vector<8x8xf32>
    %cst_38 = arith.constant dense<0.000000e+00> : vector<8x8xf32>
    %84 = tpu.matmul %83, %73, %cst_38 {dimension_numbers = #tpu.dot_dimension_numbers<[1], [0], [0], [1], [0, 0, 1, 1], [], []>} : vector<8x8xf32>, vector<8x8xf32>, vector<8x8xf32> -> vector<8x8xf32>
    %85 = tpu.concatenate %42, %56, %70, %84 in 1 : vector<8x8xf32>, vector<8x8xf32>, vector<8x8xf32>, vector<8x8xf32> -> vector<8x32xf32>
    %c0_39 = arith.constant 0 : index
    %c0_40 = arith.constant 0 : index
    %86 = vector.load %arg10[%c0_39, %c0_40] : memref<32x32xf32, #tpu.memory_space<vmem>>, vector<32x32xf32>
    %cst_41 = arith.constant dense<0.000000e+00> : vector<8x32xf32>
    %87 = tpu.matmul %85, %86, %cst_41 {dimension_numbers = #tpu.dot_dimension_numbers<[1], [0], [0], [1], [0, 0, 1, 1], [], []>} : vector<8x32xf32>, vector<32x32xf32>, vector<8x32xf32> -> vector<8x32xf32>
    %c0_42 = arith.constant 0 : index
    %c0_43 = arith.constant 0 : index
    %88 = vector.load %arg11[%c0_42, %c0_43] : memref<1x32xf32, #tpu.memory_space<vmem>>, vector<1x32xf32>
    %89 = vector.shape_cast %88 : vector<1x32xf32> to vector<32xf32>
    %90 = vector.shape_cast %89 : vector<32xf32> to vector<1x32xf32>
    %91 = vector.broadcast %90 : vector<1x32xf32> to vector<8x32xf32>
    %92 = arith.addf %87, %91 : vector<8x32xf32>
    %93 = vector.shape_cast %92 : vector<8x32xf32> to vector<1x8x32xf32>
    %c0_44 = arith.constant 0 : index
    %c0_45 = arith.constant 0 : index
    %c0_46 = arith.constant 0 : index
    %94 = vector.load %arg12[%c0_44, %c0_45, %c0_46] : memref<1x8x32xf32, #tpu.memory_space<vmem>>, vector<1x8x32xf32>
    tpu.vector_store %arg12[%c0_44, %c0_45, %c0_46], %93 {strides = array<i32>} : memref<1x8x32xf32, #tpu.memory_space<vmem>>, vector<1x8x32xf32>,
    return
  }
  func.func @transform_0(%arg0: i32) -> (i32, i32, i32) {
    %c0_i32 = arith.constant 0 : i32
    %c0_i32_0 = arith.constant 0 : i32
    %c0_i32_1 = arith.constant 0 : i32
    return %arg0, %c0_i32, %c0_i32_0 : i32, i32, i32
  }
  func.func @transform_1(%arg0: i32) -> (i32, i32, i32) {
    %c0_i32 = arith.constant 0 : i32
    %c0_i32_0 = arith.constant 0 : i32
    %c0_i32_1 = arith.constant 0 : i32
    return %arg0, %c0_i32, %c0_i32_0 : i32, i32, i32
  }
  func.func @transform_2(%arg0: i32) -> (i32, i32, i32) {
    %c0_i32 = arith.constant 0 : i32
    %c0_i32_0 = arith.constant 0 : i32
    %c0_i32_1 = arith.constant 0 : i32
    return %arg0, %c0_i32, %c0_i32_0 : i32, i32, i32
  }
  func.func @transform_3(%arg0: i32) -> (i32, i32) {
    %c0_i32 = arith.constant 0 : i32
    %c0_i32_0 = arith.constant 0 : i32
    %c0_i32_1 = arith.constant 0 : i32
    return %c0_i32, %c0_i32_0 : i32, i32
  }
  func.func @transform_4(%arg0: i32) -> (i32, i32) {
    %c0_i32 = arith.constant 0 : i32
    %c0_i32_0 = arith.constant 0 : i32
    %c0_i32_1 = arith.constant 0 : i32
    return %c0_i32, %c0_i32_0 : i32, i32
  }
  func.func @transform_5(%arg0: i32) -> (i32, i32) {
    %c0_i32 = arith.constant 0 : i32
    %c0_i32_0 = arith.constant 0 : i32
    %c0_i32_1 = arith.constant 0 : i32
    return %c0_i32, %c0_i32_0 : i32, i32
  }
  func.func @transform_6(%arg0: i32) -> (i32, i32) {
    %c0_i32 = arith.constant 0 : i32
    %c0_i32_0 = arith.constant 0 : i32
    %c0_i32_1 = arith.constant 0 : i32
    return %c0_i32, %c0_i32_0 : i32, i32
  }
  func.func @transform_7(%arg0: i32) -> (i32, i32) {
    %c0_i32 = arith.constant 0 : i32
    %c0_i32_0 = arith.constant 0 : i32
    %c0_i32_1 = arith.constant 0 : i32
    return %c0_i32, %c0_i32_0 : i32, i32
  }
  func.func @transform_8(%arg0: i32) -> (i32, i32) {
    %c0_i32 = arith.constant 0 : i32
    %c0_i32_0 = arith.constant 0 : i32
    %c0_i32_1 = arith.constant 0 : i32
    return %c0_i32, %c0_i32_0 : i32, i32
  }
  func.func @transform_9(%arg0: i32) -> (i32, i32) {
    %c0_i32 = arith.constant 0 : i32
    %c0_i32_0 = arith.constant 0 : i32
    %c0_i32_1 = arith.constant 0 : i32
    return %c0_i32, %c0_i32_0 : i32, i32
  }
  func.func @transform_10(%arg0: i32) -> (i32, i32) {
    %c0_i32 = arith.constant 0 : i32
    %c0_i32_0 = arith.constant 0 : i32
    %c0_i32_1 = arith.constant 0 : i32
    return %c0_i32, %c0_i32_0 : i32, i32
  }
  func.func @transform_11(%arg0: i32) -> (i32, i32, i32) {
    %c0_i32 = arith.constant 0 : i32
    %c0_i32_0 = arith.constant 0 : i32
    %c0_i32_1 = arith.constant 0 : i32
    return %arg0, %c0_i32, %c0_i32_0 : i32, i32, i32
  }
}

</mosaic_0001>

<bundles_post_ra>
// kernel: tpu_custom_call.1
= control target key start
LH: loop header
LB: loop body
LE: loop exit
PB: predicated region body
PF: predicated region fallthrough
CT: control target
= control target key end

     0   :  { %s1992_s0 = inlined_call_operand.hbm [shape: f32[2,8,32], index: 0, kind: input, shape index: {}]   ;;  %s1993_s1 = inlined_call_operand.hbm [shape: f32[2,8,32], index: 1, kind: input, shape index: {}]   ;;  %s1994_s2 = inlined_call_operand.hbm [shape: f32[2,8,32], index: 2, kind: input, shape index: {}]   ;;  %s1995_s3 = inlined_call_operand.hbm [shape: f32[32,32], index: 3, kind: input, shape index: {}]   ;;  %s1996_s4 = inlined_call_operand.vmem [shape: f32[1,32], index: 4, kind: input, shape index: {}]   ;;  %s1997_s5 = inlined_call_operand.hbm [shape: f32[32,32], index: 5, kind: input, shape index: {}]   ;;  %s1998_s6 = inlined_call_operand.vmem [shape: f32[1,32], index: 6, kind: input, shape index: {}]   ;;  %s1999_s7 = inlined_call_operand.hbm [shape: f32[32,32], index: 7, kind: input, shape index: {}]   ;;  %s2000_s8 = inlined_call_operand.vmem [shape: f32[1,32], index: 8, kind: input, shape index: {}]   ;;  %s2001_s9 = inlined_call_operand.hbm [shape: f32[32,32], index: 9, kind: input, shape index: {}]   ;;  %s2002_s10 = inlined_call_operand.vmem [shape: f32[1,32], index: 10, kind: input, shape index: {}]   ;;  %s2003_s11 = inlined_call_operand.hbm [shape: f32[2,8,32], index: 11, kind: output, shape index: {}]  }
   0x1   :  { %2015 = sst [smem:[#allocation25_spill]] %s1993_s1 }
   0x2   :  { %2016 = sst [smem:[#allocation26_spill]] %s1995_s3 }
   0x3   :  { %2017 = sst [smem:[#allocation27_spill]] %s1997_s5 }
   0x4   :  { %2018 = sst [smem:[#allocation28_spill]] %s1999_s7 }
   0x5   :  { %2019 = sst [smem:[#allocation29_spill]] %s2001_s9 }
   0x6   :  { %2020 = sst [smem:[#allocation30_spill]] %s2002_s10 }
   0x7   :  { %16 = vsyncpa [#allocation3], 0 }
   0x8   :  { %18 = vsyncpa [#allocation3 + $0x1], 0 }
   0x9   :  { %19 = vsyncpa [#allocation6], 0 }
   0xa   :  { %21 = vsyncpa [#allocation6 + $0x1], 0 }
   0xb   :  { %22 = vsyncpa [#allocation9], 0 }
   0xc   :  { %23 = vsyncpa [#allocation12], 0 }
   0xd   :  { %24 = vsyncpa [#allocation4], 0 }
   0xe   :  { %26 = vsyncpa [#allocation4 + $0x1], 0  ;;  %s1697_s17 = smov 0   ;;  %s1699_s18 = smov 0  }
   0xf   :  { %s1701_s19 = smov 0   ;;  %s1703_s20 = smov 0  }
  0x10 LB: > { %2021 = sst [smem:[#allocation20_spill]] %s1611_s17  ;;  %s1721_s24 = sadd.s32 4294967295, %s1623_s20   ;;  %s1623_s20 = sphi %s1703_s20, %s2049_s20   ;;  %s1619_s19 = sphi %s1701_s19, %s2053_s19   ;;  %s1615_s18 = sphi %s1699_s18, %s2052_s18   ;;  %s1611_s17 = sphi %s1697_s17, %s2051_s17  }
  0x11   : > { %2022 = sst [smem:[#allocation21_spill]] %s1623_s20  ;;  %p1169_p0 = scmp.ge.s32.totalorder %s1623_s20, 1 }
  0x12   : > { %s2023_s3 = sld [smem:[#allocation26_spill]]  ;;  %p2014_p1 = scmp.eq.s32.totalorder %s1721_s24, 0 }
  0x13   : > { %p309_p2 = scmp.lt.s32.totalorder %s1623_s20, 3  ;;  %s1625_s26 = smov [#allocation8]  }
  0x14   : > { %s322_s27 = sshll.u32 %s1625_s26, 4  ;;  %s2025_s7 = sld [smem:[#allocation28_spill]]  ;;  %s323_s27 = int_to_ptr.vmem [resolvable:$true] %s322_s27 }
  0x15   : > { %p1726_p3 = pnand %p1169_p0, %p309_p2  ;;  %s1626_s13 = smov [#allocation11]  }
  0x16   : > { %s356_s14 = sshll.u32 %s1626_s13, 4  ;;  %s2004_s15 = smov 128   ;;  %s357_s14 = int_to_ptr.vmem [resolvable:$true] %s356_s14 }
  0x17   : > { %p1234_p4 = pneg %p1726_p3  ;;  %s2006_s16 = smov 8  }
  0x18   : > { %s320_s23 = sshll.u32 %s2023_s3, 4  ;;  %s1168_s21 = sadd.s32 4294967294, %s1623_s20   ;;  %s321_s23 = int_to_ptr.hbm [resolvable:$true] %s320_s23 }
  0x19   : > { %p1738_p6 = pnand %p1234_p4, %p2014_p1  ;;  %s1754_s22 = sadd.s32 1, %s1623_s20  }
  0x1a   : > { %s354_s30 = sshll.u32 %s2025_s7, 4  ;;  %2027 = sst [smem:[#allocation22_spill]] %s1754_s22  ;;  %s355_s30 = int_to_ptr.hbm [resolvable:$true] %s354_s30 }
  0x1b   : > { %1237 = dma.hbm_to_vmem [thread:$0]  (!%p1738_p6), %s321_s23, 512, %s323_s27, [#allocation9], %s2004_s15, %s2004_s15, %s2006_s16  }
  0x1c   : > { %1243 = dma.hbm_to_vmem [thread:$0]  (!%p1738_p6), %s355_s30, 512, %s357_s14, [#allocation12], %s2004_s15, %s2004_s15, %s2006_s16  }
  0x1d   : > { %s36_s26 = ssub.s32 %s1623_s20, %s1754_s22  ;;  %s39_s28 = sadd.s32 1, %s1619_s19 }
  0x1e   : > { %p37_p7 = scmp.eq.s32.totalorder %s36_s26, 0  ;;  %p46_p8 = scmp.ne.s32.totalorder %s1619_s19, %s1615_s18 }
  0x1f   : > { %p47_p9 = scmp.eq.s32.totalorder %s1623_s20, 0  ;;  %p52_p10 = scmp.ne.s32.totalorder %s1615_s18, %s1611_s17 }
  0x20   : > { %s1765_s23 = scalar_select %p37_p7, %s1619_s19, %s39_s28  }
  0x21   : > { %p48_p11 = por %p47_p9, %p46_p8  ;;  %p1769_p12 = por %p2014_p1, %p52_p10 }
  0x22   : > { %2028 = sst [smem:[#allocation23_spill]] %s1765_s23  ;;  %p296_p13 = scmp.eq.s32.totalorder %s1721_s24, 1 }
  0x23   : > { %p302_p0 = scmp.eq.s32.totalorder %s1168_s21, 1  ;;  %p1265_p2 = scmp.lt.s32.totalorder %s1623_s20, 2 }
  0x24   : > { %s2010_s29 = sand.u32 1, %s1619_s19   ;;  %p1776_p4 = por %p296_p13, %p46_p8 }
  0x25   : > { %p1780_p5 = por %p302_p0, %p52_p10  ;;  %s1786_s14 = sshll.u32 %s2010_s29, 3 }
  0x26   : > { %s1789_s26 = sshll.u32 %s1623_s20, 3  ;;  %p1791_p7 = pnand %p1265_p2, %p48_p11 }
  0x27   : > { %s2031_s13 = scalar_select %p1780_p5, 1, 0 }
  0x28   : > { %s409_s21 = sand.u32 1, %s1623_s20   ;;  %s2034_s1 = sld [smem:[#allocation25_spill]] }
  0x29   : > { %2032 = sst [smem:[#allocation24_spill]] %s2031_s13  ;;  %s413_s23 = scalar_lea.vmem [#allocation5], %s1786_s14 }
  0x2a   : > { %s421_s22 = sshll.u32 %s413_s23, 4  ;;  %s1801_s29 = scalar_lea.sflag [#allocation6], %s409_s21  ;;  %s422_s22 = int_to_ptr.vmem [resolvable:$true] %s421_s22 }
  0x2b   : > { %p1399_p9 = pneg %p1791_p7 }
  0x2e   : > { %s417_s3 = scalar_lea.hbm %s2034_s1, %s1789_s26 }
  0x2f   : > { %s419_s7 = sshll.u32 %s417_s3, 4  ;;  %s1402_s3 = scalar_lea.hbm %s2034_s1, 16  ;;  %s420_s7 = int_to_ptr.hbm [resolvable:$true] %s419_s7 }
  0x30   : > { %s1395_s13 = sshra.s32 %s420_s7, 4  ;;  %s1396_s13 = int_to_ptr.hbm [resolvable:$true] %s1395_s13 }
  0x31   : > { %s1397_s17 = scalar_lea.hbm %s1396_s13, 8  ;;  %p1403_p13 = scmp.lt.s32.totalorder %s1396_s13, %s2034_s1 }
  0x32   : > { %p1398_p8 = scmp.ne.s32.totalorder %s1396_s13, %s1397_s17  ;;  %p1404_p0 = scmp.lt.s32.totalorder %s1402_s3, %s1397_s17 }
  0x34   : > { %p1400_p10 = pnand %p1399_p9, %p1398_p8  ;;  %p1405_p2 = por %p1404_p0, %p1403_p13 }
  0x36   : > { %p1401_p11 = pneg %p1400_p10 }
  0x38   : > { %p1406_p1 = pnand %p1405_p2, %p1401_p11 }
  0x3a   : > { %1409 = shalt.err (!%p1406_p1)
}
  0x3b   : > { %1253 = dma.hbm_to_vmem [thread:$0]  (!%p1791_p7), %s420_s7, 128, %s422_s22, %s1801_s29  }
  0x3c   : > { %s2035_s5 = sld [smem:[#allocation27_spill]]  ;;  %s1629_s15 = smov [#allocation10]  }
  0x3d   : > { %s339_s13 = sshll.u32 %s1629_s15, 4  ;;  %s2036_s9 = sld [smem:[#allocation29_spill]]  ;;  %s340_s13 = int_to_ptr.vmem [resolvable:$true] %s339_s13 }
  0x3e   : > { %s2037_s23 = smov 8   ;;  %s2038_s1 = smov 128  }
  0x3f   : > { %s1630_s7 = smov [#allocation13]   ;;  %s398_s15 = scalar_lea.hbm %s1992_s0, %s1789_s26 }
  0x40   : > { %s373_s22 = sshll.u32 %s1630_s7, 4  ;;  %s394_s17 = scalar_lea.vmem [#allocation2], %s1786_s14  ;;  %s374_s22 = int_to_ptr.vmem [resolvable:$true] %s373_s22 }
  0x41   : > { %s402_s3 = sshll.u32 %s394_s17, 4  ;;  %s403_s3 = int_to_ptr.vmem [resolvable:$true] %s402_s3 }
  0x42   : > { %s337_s20 = sshll.u32 %s2035_s5, 4  ;;  %s400_s5 = sshll.u32 %s398_s15, 4  ;;  %s338_s20 = int_to_ptr.hbm [resolvable:$true] %s337_s20  ;;  %s401_s5 = int_to_ptr.hbm [resolvable:$true] %s400_s5 }
  0x43   : > { %s371_s16 = sshll.u32 %s2036_s9, 4  ;;  %s1485_s9 = sshra.s32 %s401_s5, 4  ;;  %s372_s16 = int_to_ptr.hbm [resolvable:$true] %s371_s16  ;;  %s1486_s9 = int_to_ptr.hbm [resolvable:$true] %s1485_s9 }
  0x44   : > { %1240 = dma.hbm_to_vmem [thread:$0]  (!%p1738_p6), %s338_s20, 512, %s340_s13, [#allocation9], %s2038_s1, %s2038_s1, %s2037_s23  }
  0x45   : > { %1246 = dma.hbm_to_vmem [thread:$0]  (!%p1738_p6), %s372_s16, 512, %s374_s22, [#allocation12], %s2038_s1, %s2038_s1, %s2037_s23  }
  0x46   : > { %s2039_s20 = sand.u32 1, %s1619_s19   ;;  %s1487_s7 = scalar_lea.hbm %s1486_s9, 8 }
  0x47   : > { %s391_s13 = scalar_lea.sflag [#allocation3], %s2039_s20  ;;  %p1488_p1 = scmp.ne.s32.totalorder %s1486_s9, %s1487_s7 }
  0x48   : > { %s1492_s16 = scalar_lea.hbm %s1992_s0, 16  ;;  %p1493_p6 = scmp.lt.s32.totalorder %s1486_s9, %s1992_s0 }
  0x49   : > { %p1490_p8 = pnand %p1488_p1, %p1399_p9  ;;  %p1494_p11 = scmp.lt.s32.totalorder %s1492_s16, %s1487_s7 }
  0x4b   : > { %p1491_p10 = pneg %p1490_p8  ;;  %p1495_p13 = por %p1494_p11, %p1493_p6 }
  0x4d   : > { %p1496_p0 = pnand %p1495_p13, %p1491_p10 }
  0x4f   : > { %1499 = shalt.err (!%p1496_p0)
}
  0x50   : > { %1250 = dma.hbm_to_vmem [thread:$0]  (!%p1791_p7), %s401_s5, 128, %s403_s3, %s391_s13  }
  0x51   : > { %s436_s15 = scalar_lea.hbm %s1994_s2, %s1789_s26  ;;  %s432_s17 = scalar_lea.vmem [#allocation7], %s1786_s14 }
  0x52   : > { %s440_s20 = sshll.u32 %s432_s17, 4  ;;  %s438_s1 = sshll.u32 %s436_s15, 4  ;;  %s441_s20 = int_to_ptr.vmem [resolvable:$true] %s440_s20  ;;  %s439_s1 = int_to_ptr.hbm [resolvable:$true] %s438_s1 }
  0x53   : > { %s1515_s9 = sshra.s32 %s439_s1, 4  ;;  %s1522_s5 = scalar_lea.hbm %s1994_s2, 16  ;;  %s1516_s9 = int_to_ptr.hbm [resolvable:$true] %s1515_s9 }
  0x54   : > { %s1517_s7 = scalar_lea.hbm %s1516_s9, 8  ;;  %p1523_p10 = scmp.lt.s32.totalorder %s1516_s9, %s1994_s2 }
  0x55   : > { %p1518_p2 = scmp.ne.s32.totalorder %s1516_s9, %s1517_s7  ;;  %p1524_p6 = scmp.lt.s32.totalorder %s1522_s5, %s1517_s7 }
  0x57   : > { %p1520_p1 = pnand %p1518_p2, %p1399_p9  ;;  %p1525_p11 = por %p1524_p6, %p1523_p10 }
  0x59   : > { %p1521_p8 = pneg %p1520_p1 }
  0x5b   : > { %p1526_p13 = pnand %p1525_p11, %p1521_p8 }
  0x5d   : > { %1529 = shalt.err (!%p1526_p13)
}
  0x5e   : > { %1256 = dma.hbm_to_vmem [thread:$0]  (!%p1791_p7), %s439_s1, 128, %s441_s20, %s1801_s29  }
  0x5f   : > { %449 = sbr.rel (%p1726_p3) target bundleno = 1152 (0x480), region = 64  ;;  %s1871_s14 = sand.u32 (!%p1726_p3), 1, %s1615_s18  }
  0x60   : > { %s1874_s26 = sshll.u32 (!%p1726_p3), %s1871_s14, 3  ;;  %s452_s23 = scalar_lea.sflag (!%p1726_p3), [#allocation3], %s1871_s14 }
  0x61   : > { %s455_s22 = scalar_lea.vmem (!%p1726_p3), [#allocation2], %s1874_s26 }
  0x64   : > { %1590 = dma.done.wait (%p1769_p12), %s452_s23, 128  }
  0x65   : > { %1592 = vsyncadd (%p1769_p12), %s452_s23, 4294967168  ;;  %s461_s25 = sand.u32 1, %s1721_s24   ;;  %s465_s28 = scalar_lea.vmem [#allocation5], %s1874_s26 }
  0x66   : > { %s462_s29 = scalar_lea.sflag [#allocation6], %s461_s25 }
  0x67   : > { %1594 = dma.done.wait (%p1769_p12), %s462_s29, 256  }
  0x68   : > { %1596 = vsyncadd (%p1769_p12), %s462_s29, 4294967040  ;;  %s475_s10 = scalar_lea.vmem [#allocation7], %s1874_s26  ;;  %p2040_p3 = scmp.eq.s32.totalorder %s1721_s24, 0 }
  0x6a   : > { %1598 = dma.done.wait (%p2040_p3), [#allocation9], 1024   ;;  %p2041_p7 = pmov %p2040_p3 }
  0x6b   : > { %p2042_p9 = pmov %p2040_p3 }
  0x6c   : > { %1600 = vsyncadd (%p2041_p7), [#allocation9], 4294966272 }
  0x6d   : > { %1602 = dma.done.wait (%p2042_p9), [#allocation12], 1024   ;;  %p2043_p0 = pmov %p2040_p3 }
  0x6e   : > { %v583_v0 = vld [vmem:[#allocation10 + $0x18] sm:$0xff]  ;;  %v582_v2 = vld [vmem:[#allocation10 + $0x10] sm:$0xff]  ;;  %v581_v4 = vld [vmem:[#allocation10 + $0x8] sm:$0xff]  ;;  %vm556_vm0 = vcmask 261120   ;;  %vm643_vm1 = vcmask 64512   ;;  %s1631_s20 = smov 104  }
  0x6f   : > { %1604 = vsyncadd (%p2043_p0), [#allocation12], 4294966272  ;;  %v551_v1 = vld [vmem:[#allocation8 + $0x18] sm:$0xff]  ;;  %603 = vmatpush.msra.mxu1 %v583_v0  ;;  %v550_v3 = vld [vmem:[#allocation8 + $0x10] sm:$0xff]  ;;  %s1632_s1 = smov 120   ;;  %s1633_s9 = smov 112  }
  0x70   : > { %572 = vmatpush.msra.mxu0 %v551_v1  ;;  %v549_v5 = vld [vmem:[#allocation8 + $0x8] sm:$0xff]  ;;  %v580_v6 = vld [vmem:[#allocation10] sm:$0xff]  ;;  %v545_v9 = vld [vmem:[%s455_s22] sm:$0xff]  ;;  %s1634_s16 = smov 8   ;;  %s1635_s5 = smov 16  }
  0x71   : > { %604 = vmatpush.msra.mxu1 %v582_v2  ;;  %v548_v7 = vld [vmem:[#allocation8] sm:$0xff]  ;;  %v1315_v10 = vld [vmem:[%s1998_s6] ss:$0 sm:$0xff]  ;;  %v614_v17 = vld [vmem:[#allocation11 + $0x18] sm:$0xff]  ;;  %s1636_s3 = smov 24   ;;  %s1207_s13 = sshll.u32 %s1721_s24, 3 }
  0x72   : > { %573 = vmatpush.msra.mxu0 %v550_v3  ;;  %v546_v8 = vld [vmem:[%s465_s28] sm:$0xff]  ;;  %v1316_v11 = vld [vmem:[%s1996_s4] ss:$0 sm:$0xff]  ;;  %634 = vmatpush.msra.mxu2 %v614_v17  ;;  %s1012_s25 = scalar_lea.hbm %s2003_s11, %s1207_s13  ;;  %s544_s27 = scalar_lea.vmem [#allocation14], %s1874_s26 }
  0x73   : > { %605 = vmatpush.msra.mxu1 %v581_v4  ;;  %v613_v18 = vld [vmem:[#allocation11 + $0x10] sm:$0xff]  ;;  %v612_v19 = vld [vmem:[#allocation11 + $0x8] sm:$0xff]  ;;  %v611_v20 = vld [vmem:[#allocation11] sm:$0xff]  ;;  %s1014_s21 = sshll.u32 %s544_s27, 4  ;;  %s1016_s15 = sshll.u32 %s1012_s25, 4  ;;  %s1015_s21 = int_to_ptr.vmem [resolvable:$true] %s1014_s21  ;;  %s1017_s15 = int_to_ptr.hbm [resolvable:$true] %s1016_s15 }
  0x74   : > { %574 = vmatpush.msra.mxu0 %v549_v5  ;;  %635 = vmatpush.msra.mxu2 %v613_v18  ;;  %v547_v21 = vld [vmem:[%s475_s10] sm:$0xff]  ;;  %s2044_s10 = sld [smem:[#allocation30_spill]]  ;;  %s1002_s17 = scalar_lea.sflag [#allocation4], %s1871_s14 }
  0x75   : > { %606 = vmatpush.msra.mxu1 %v580_v6  ;;  %v1317_v30 = vld [vmem:[%s2000_s8] ss:$0 sm:$0xff]  ;;  %s1559_s24 = sshra.s32 %s1017_s15, 4  ;;  %s1565_s26 = scalar_lea.hbm %s2003_s11, 16  ;;  %s1560_s24 = int_to_ptr.hbm [resolvable:$true] %s1559_s24 }
  0x76   : > { %575 = vmatpush.msra.mxu0 %v548_v7  ;;  %1191 = vmatmul.msk.f32.vlgmr.msra.gmra.mxu1 %vm556_vm0, %v546_v8  ;;  %p1566_p8 = scmp.lt.s32.totalorder %s1560_s24, %s2003_s11 }
  0x77   : > { %1190 = vmatmul.msk.f32.vlgmr.msra.gmra.mxu0 %vm556_vm0, %v545_v9  ;;  %636 = vmatpush.msra.mxu2 %v612_v19 }
  0x79   : > { %637 = vmatpush.msra.mxu2 %v611_v20 }
  0x7a   : > { %1192 = vmatmul.msk.f32.vlgmr.msra.gmra.mxu2 %vm556_vm0, %v547_v21 }
  0xf3   : > { %v608_v12 = vpop.f32.mrf.mxu1 }
  0xf4   : > { %v577_v13 = vpop.f32.mrf.mxu0  ;;  %v609_v14 = vadd.f32 %v1315_v10, %v608_v12 }
  0xf5   : > { %v578_v15 = vadd.f32 %v1316_v11, %v577_v13 }
  0xf6   : > { %876 = vrot.lane.b32.xlu2 %v609_v14, %s1631_s20  ;;  %719 = vrot.lane.b32.xlu1 %v609_v14, %s1632_s1 }
  0xf7   : > { %v642_v16 = vmul.f32 0.35355338, %v578_v15  ;;  %798 = vrot.lane.b32.xlu0 %v609_v14, %s1633_s9  ;;  %1193 = vmatpush.xpose.msk.msra.mxu3 %vm643_vm1, %v609_v14 }
  0xfa   : > { %1194 = vmatmul.msk.f32.vlgmr.msra.gmra.mxu3 %vm643_vm1, %v642_v16 }
  0xfd   : > { %v639_v31 = vpop.f32.mrf.mxu2 }
  0xfe   : > { %874 = vrot.lane.b32.xlu2 %v642_v16, %s1631_s20  ;;  %717 = vrot.lane.b32.xlu1 %v642_v16, %s1632_s1  ;;  %v640_v32 = vadd.f32 %v1317_v30, %v639_v31 }
  0xff   : > { %796 = vrot.lane.b32.xlu0 %v642_v16, %s1633_s9 }
 0x100   : > { %712 = vmatpush.msrb.mxu3 %v640_v32 }
 0x150   : > { %v877_v23 = vpop.permute.xlu2 %876 }
 0x158   : > { %v875_v27 = vpop.permute.xlu2 %874 }
 0x168   : > { %v720_v22 = vpop.permute.xlu1 %719 }
 0x169   : > { %v799_v24 = vpop.permute.xlu0 %798  ;;  %1196 = vmatpush.xpose.msk.msrb.mxu0 %vm643_vm1, %v720_v22 }
 0x16a   : > { %1199 = vmatpush.xpose.msk.msrb.mxu2 %vm643_vm1, %v799_v24 }
 0x16d   : > { %1202 = vmatpush.xpose.msk.msra.mxu0 %vm643_vm1, %v877_v23 }
 0x170   : > { %v718_v25 = vpop.permute.xlu1 %717 }
 0x171   : > { %v797_v26 = vpop.permute.xlu0 %796  ;;  %1197 = vmatmul.msk.f32.vlgmr.msrb.gmra.mxu0 %vm643_vm1, %v718_v25 }
 0x172   : > { %1200 = vmatmul.msk.f32.vlgmr.msrb.gmra.mxu2 %vm643_vm1, %v797_v26 }
 0x179   : > { %1203 = vmatmul.msk.f32.vlgmr.msra.gmra.mxu0 %vm643_vm1, %v875_v27 }
 0x17d   : > { %v667_v28 = vpop.f32.mrf.mxu3 }
 0x17e   : > { %v670_v29 = vsel %vm643_vm1, %v667_v28, -inf }
 0x17f   : > { %671 = vmax.xlane.f32.xlu0 %v670_v29 }
 0x1ee   : > { %v742_v33 = vpop.f32.mrf.mxu0 }
 0x1ef   : > { %v745_v34 = vsel %vm643_vm1, %v742_v33, -inf }
 0x1f0   : > { %746 = vmax.xlane.f32.xlu1 %v745_v34 }
 0x1f2   : > { %v672_v35 = vpop.xlane.xlu0 %671 }
 0x1f3   : > { %v673_v36 = vsub.f32 %v667_v28, %v672_v35 }
 0x1f5   : > { %v674_v37 = vmul.f32 1.442695, %v673_v36  ;;  %v821_v38 = vpop.f32.mrf.mxu2 }
 0x1f6   : > { %v824_v39 = vsel %vm643_vm1, %v821_v38, -inf  ;;  %v899_v40 = vpop.f32.mrf.mxu0 }
 0x1f7   : > { %1319 = vpow2.f32 %v674_v37  ;;  %825 = vmax.xlane.f32.xlu2 %v824_v39  ;;  %v902_v42 = vsel %vm643_vm1, %v899_v40, -inf }
 0x1fd   : > { %v1320_v41 = vpop.eup %1319 }
 0x1fe   : > { %v676_v43 = vsel %vm643_vm1, %v1320_v41, 0.0 }
 0x1ff   : > { %903 = vmax.xlane.f32.xlu2 %v902_v42  ;;  %677 = vadd.xlane.f32.xlu0 %v676_v43 }
 0x263   : > { %v747_v44 = vpop.xlane.xlu1 %746 }
 0x264   : > { %v748_v45 = vsub.f32 %v742_v33, %v747_v44 }
 0x266   : > { %v749_v46 = vmul.f32 1.442695, %v748_v45 }
 0x268   : > { %1321 = vpow2.f32 %v749_v46 }
 0x26a   : > { %v826_v47 = vpop.xlane.xlu2 %825 }
 0x26b   : > { %v827_v48 = vsub.f32 %v821_v38, %v826_v47 }
 0x26d   : > { %v828_v49 = vmul.f32 1.442695, %v827_v48 }
 0x26e   : > { %v1930_v50 = vpop.eup %1321 }
 0x26f   : > { %1323 = vpow2.f32 %v828_v49  ;;  %v751_v51 = vsel %vm643_vm1, %v1930_v50, 0.0 }
 0x270   : > { %752 = vadd.xlane.f32.xlu1 %v751_v51  ;;  %v971_v51 = vld [vmem:[#allocation13 + $0x10] sm:$0xff] }
 0x272   : > { %v904_v52 = vpop.xlane.xlu2 %903  ;;  %v678_v53 = vpop.xlane.xlu0 %677 }
 0x273   : > { %v905_v54 = vsub.f32 %v899_v40, %v904_v52  ;;  %1325 = vrcp.f32 %v678_v53  ;;  %v690_v62 = vand.u32 2147483648, %v678_v53  ;;  %v688_v0 = vand.u32 2147483647, %v678_v53  ;;  %v970_v52 = vld [vmem:[#allocation13 + $0x8] sm:$0xff] }
 0x274   : > { %vm684_vm3 = vweird.f32 %v678_v53 }
 0x275   : > { %v1934_v55 = vpop.eup %1323  ;;  %v906_v56 = vmul.f32 1.442695, %v905_v54  ;;  %v691_v3 = vor.u32 1.1754944e-38, %v690_v62  ;;  %vm689_vm5 = vcmp.eq.f32.partialorder %v688_v0, 8.507059e+37 }
 0x276   : > { %v830_v57 = vsel %vm643_vm1, %v1934_v55, 0.0 }
 0x277   : > { %1327 = vpow2.f32 %v906_v56  ;;  %831 = vadd.xlane.f32.xlu2 %v830_v57 }
 0x279   : > { %v1326_v58 = vpop.eup %1325 }
 0x27a   : > { %v680_v59 = vmul.f32 %v1326_v58, %v678_v53  ;;  %vm685_vm2 = vweird.f32 %v1326_v58  ;;  %v969_v53 = vld [vmem:[#allocation13] sm:$0xff] }
 0x27b   : > { %vm686_vm4 = vmor %vm684_vm3, %vm685_vm2 }
 0x27c   : > { %v681_v60 = vsub.f32 1.0, %v680_v59 }
 0x27d   : > { %v1938_v61 = vpop.eup %1327 }
 0x27e   : > { %v682_v63 = vmul.f32 %v1326_v58, %v681_v60  ;;  %v908_v1 = vsel %vm643_vm1, %v1938_v61, 0.0  ;;  %v1318_v60 = vld [vmem:[%s2044_s10] ss:$0 sm:$0xff] }
 0x27f   : > { %909 = vadd.xlane.f32.xlu0 %v908_v1 }
 0x280   : > { %v683_v2 = vadd.f32 %v1326_v58, %v682_v63 }
 0x282   : > { %v687_v4 = vsel %vm686_vm4, %v1326_v58, %v683_v2  ;;  %vm965_vm4 = vcmask 130048  }
 0x283   : > { %v692_v5 = vsel %vm689_vm5, %v691_v3, %v687_v4  ;;  %vm967_vm5 = vcmask 195584  }
 0x284   : > { %v693_v6 = vmul.f32 %v1320_v41, %v692_v5 }
 0x286   : > { %1195 = vmatmul.msk.f32.vlgmr.msrb.gmra.mxu3 %vm643_vm1, %v693_v6 }
 0x289   : > { %770 = vrot.lane.b32.xlu1 %v640_v32, %s1632_s1 }
 0x28f   : > { %848 = vrot.lane.b32.xlu2 %v640_v32, %s1633_s9 }
 0x293   : > { %926 = vrot.lane.b32.xlu0 %v640_v32, %s1631_s20  ;;  %s1561_s20 = scalar_lea.hbm %s1560_s24, 8 }
 0x294   : > { %p1562_p12 = scmp.ne.s32.totalorder %s1560_s24, %s1561_s20  ;;  %p1567_p10 = scmp.lt.s32.totalorder %s1565_s26, %s1561_s20 }
 0x296   : > { %p1563_p2 = pnand %p1562_p12, %p1776_p4  ;;  %p1568_p6 = por %p1567_p10, %p1566_p8 }
 0x298   : > { %p1564_p1 = pneg %p1563_p2 }
 0x29a   : > { %p1569_p11 = pnand %p1568_p6, %p1564_p1 }
 0x2e3   : > { %v753_v7 = vpop.xlane.xlu1 %752 }
 0x2e4   : > { %1329 = vrcp.f32 %v753_v7  ;;  %v765_v15 = vand.u32 2147483648, %v753_v7  ;;  %vm759_vm7 = vweird.f32 %v753_v7  ;;  %v763_v19 = vand.u32 2147483647, %v753_v7 }
 0x2e6   : > { %v766_v23 = vor.u32 1.1754944e-38, %v765_v15  ;;  %vm764_vm10 = vcmp.eq.f32.partialorder %v763_v19, 8.507059e+37 }
 0x2ea   : > { %v1330_v8 = vpop.eup %1329  ;;  %v832_v9 = vpop.xlane.xlu2 %831 }
 0x2eb   : > { %v755_v10 = vmul.f32 %v1330_v8, %v753_v7  ;;  %1331 = vrcp.f32 %v832_v9  ;;  %vm760_vm6 = vweird.f32 %v1330_v8  ;;  %v844_v21 = vand.u32 2147483648, %v832_v9 }
 0x2ec   : > { %vm761_vm8 = vmor %vm759_vm7, %vm760_vm6  ;;  %v842_v25 = vand.u32 2147483647, %v832_v9  ;;  %vm838_vm11 = vweird.f32 %v832_v9 }
 0x2ed   : > { %v756_v11 = vsub.f32 1.0, %v755_v10  ;;  %v845_v29 = vor.u32 1.1754944e-38, %v844_v21 }
 0x2ee   : > { %vm843_vm13 = vcmp.eq.f32.partialorder %v842_v25, 8.507059e+37 }
 0x2ef   : > { %v757_v12 = vmul.f32 %v1330_v8, %v756_v11 }
 0x2f1   : > { %v1332_v13 = vpop.eup %1331  ;;  %v758_v14 = vadd.f32 %v1330_v8, %v757_v12 }
 0x2f2   : > { %v834_v16 = vmul.f32 %v1332_v13, %v832_v9  ;;  %v849_v17 = vpop.permute.xlu2 %848  ;;  %v910_v18 = vpop.xlane.xlu0 %909  ;;  %vm839_vm9 = vweird.f32 %v1332_v13 }
 0x2f3   : > { %1333 = vrcp.f32 %v910_v18  ;;  %869 = vmatpush.msra.mxu3 %v849_v17  ;;  %v762_v22 = vsel %vm761_vm8, %v1330_v8, %v758_v14  ;;  %vm840_vm12 = vmor %vm838_vm11, %vm839_vm9  ;;  %v922_v37 = vand.u32 2147483648, %v910_v18  ;;  %v920_v39 = vand.u32 2147483647, %v910_v18 }
 0x2f4   : > { %v835_v20 = vsub.f32 1.0, %v834_v16  ;;  %v767_v27 = vsel %vm764_vm10, %v766_v23, %v762_v22  ;;  %vm916_vm15 = vweird.f32 %v910_v18 }
 0x2f5   : > { %v768_v34 = vmul.f32 %v1930_v50, %v767_v27  ;;  %v923_v41 = vor.u32 1.1754944e-38, %v922_v37  ;;  %vm921_vm3 = vcmp.eq.f32.partialorder %v920_v39, 8.507059e+37  ;;  %v972_v50 = vld [vmem:[#allocation13 + $0x18] sm:$0xff] }
 0x2f6   : > { %v836_v24 = vmul.f32 %v1332_v13, %v835_v20  ;;  %992 = vmatpush.msra.mxu2 %v972_v50 }
 0x2f8   : > { %v837_v26 = vadd.f32 %v1332_v13, %v836_v24  ;;  %993 = vmatpush.msra.mxu2 %v971_v51 }
 0x2f9   : > { %v1334_v28 = vpop.eup %1333 }
 0x2fa   : > { %v841_v30 = vsel %vm840_vm12, %v1332_v13, %v837_v26  ;;  %v912_v31 = vmul.f32 %v1334_v28, %v910_v18  ;;  %vm917_vm14 = vweird.f32 %v1334_v28  ;;  %994 = vmatpush.msra.mxu2 %v970_v52 }
 0x2fb   : > { %v846_v32 = vsel %vm843_vm13, %v845_v29, %v841_v30  ;;  %v771_v33 = vpop.permute.xlu1 %770  ;;  %vm918_vm2 = vmor %vm916_vm15, %vm917_vm14 }
 0x2fc   : > { %v913_v35 = vsub.f32 1.0, %v912_v31  ;;  %791 = vmatpush.msrb.mxu1 %v771_v33  ;;  %v847_v36 = vmul.f32 %v1934_v55, %v846_v32  ;;  %995 = vmatpush.msra.mxu2 %v969_v53 }
 0x2fd   : > { %1198 = vmatmul.msk.f32.vlgmr.msrb.gmra.mxu1 %vm643_vm1, %v768_v34 }
 0x2fe   : > { %v914_v38 = vmul.f32 %v1334_v28, %v913_v35  ;;  %1201 = vmatmul.msk.f32.vlgmr.msra.gmra.mxu3 %vm643_vm1, %v847_v36 }
 0x300   : > { %v915_v40 = vadd.f32 %v1334_v28, %v914_v38 }
 0x302   : > { %v919_v42 = vsel %vm918_vm2, %v1334_v28, %v915_v40 }
 0x303   : > { %v924_v43 = vsel %vm921_vm3, %v923_v41, %v919_v42 }
 0x304   : > { %v925_v44 = vmul.f32 %v1938_v61, %v924_v43 }
 0x305   : > { %v927_v45 = vpop.permute.xlu0 %926 }
 0x306   : > { %947 = vmatpush.msra.mxu1 %v927_v45 }
 0x307   : > { %1204 = vmatmul.msk.f32.vlgmr.msra.gmra.mxu1 %vm643_vm1, %v925_v44 }
 0x309   : > { %v714_v46 = vpop.f32.mrf.mxu3 }
 0x37a   : > { %v793_v47 = vpop.f32.mrf.mxu1 }
 0x37b   : > { %953 = vrot.lane.b32.xlu1 %v793_v47, %s1634_s16 }
 0x381   : > { %v871_v48 = vpop.f32.mrf.mxu3 }
 0x382   : > { %957 = vrot.lane.b32.xlu0 %v871_v48, %s1635_s5 }
 0x384   : > { %v949_v49 = vpop.f32.mrf.mxu1 }
 0x385   : > { %961 = vrot.lane.b32.xlu2 %v949_v49, %s1636_s3 }
 0x3df   : > { %v962_v57 = vpop.permute.xlu2 %961 }
 0x3ed   : > { %v954_v54 = vpop.permute.xlu1 %953 }
 0x3ee   : > { %v964_v55 = vsel %vm643_vm1, %v714_v46, %v954_v54 }
 0x3f4   : > { %v958_v56 = vpop.permute.xlu0 %957 }
 0x3f5   : > { %v966_v58 = vsel %vm965_vm4, %v964_v55, %v958_v56 }
 0x3f6   : > { %v968_v59 = vsel %vm967_vm5, %v966_v58, %v962_v57 }
 0x3f7   : > { %1205 = vmatmul.msk.f32.vlgmr.msra.gmra.mxu2 %vm556_vm0, %v968_v59 }
 0x47a   : > { %v997_v61 = vpop.f32.mrf.mxu2 }
 0x47b   : > { %v998_v62 = vadd.f32 %v1318_v60, %v997_v61 }
 0x47d   : > { %1000 = vst.msk [vmem:[%s544_s27] sm:$0xff] %vm556_vm0, %v998_v62 }
 0x47e   : > { %1572 = shalt.err (!%p1569_p11)
}
 0x47f   : > { %1232 = dma.vmem_to_hbm [thread:$0]  (%p1776_p4), %s1015_s21, 128, %s1017_s15, %s1002_s17  }
 0x480 PF: > { %s2045_s14 = sld [smem:[#allocation20_spill]] }
 0x481   : > { %s2047_s5 = sld [smem:[#allocation21_spill]] }
 0x486   : > { %s1028_s3 = sand.u32 1, %s2045_s14  }
 0x487   : > { %p2048_p13 = scmp.ge.s32.totalorder %s2047_s5, 2  ;;  %s1029_s13 = scalar_lea.sflag [#allocation4], %s1028_s3 }
 0x489   : > { %p1258_p3 = pnand %p2048_p13, %p1780_p5 }
 0x48b   : > { %p1259_p7 = pneg %p1258_p3 }
 0x48d   : > { %1606 = dma.done.wait (%p1259_p7), %s1029_s13, 128  }
 0x48e   : > { %1608 = vsyncadd (%p1259_p7), %s1029_s13, 4294967168  ;;  %s2049_s20 = sld [smem:[#allocation22_spill]]  ;;  %s2051_s17 = smov %s1615_s18 }
 0x48f   : > { %s2050_s23 = sld [smem:[#allocation23_spill]]  ;;  %s2052_s18 = smov %s1619_s19 }
 0x494   : > { %p29_p9 = scmp.ge.s32.totalorder %s2049_s20, 4  }
 0x495   : > { %s2053_s19 = smov %s2050_s23 }
 0x496   :  { %31 = sbr.rel (!%p29_p9) target bundleno = 16 (0x10), region = 149 }
 0x49b   :  { %1035 = vsyncpa [#allocation3], 1 }
 0x49c   :  { %1037 = vsyncpa [#allocation3 + $0x1], 1 }
 0x49d   :  { %1038 = vsyncpa [#allocation6], 1 }
 0x49e   :  { %1040 = vsyncpa [#allocation6 + $0x1], 1 }
 0x49f   :  { %1041 = vsyncpa [#allocation9], 1 }
 0x4a0   :  { %1042 = vsyncpa [#allocation12], 1 }
 0x4a1   :  { %1043 = vsyncpa [#allocation4], 1 }
 0x4a2   :  { %1045 = vsyncpa [#allocation4 + $0x1], 1 }

</bundles_post_ra>
